<compile_context>
chip_gen: v5e
topology: v5e:2x2
jax: 0.10.0
libtpu: 0.0.40
codegen_flags: <defaults>
</compile_context>

<pallas_src>
import jax
import jax.numpy as jnp
from jax import lax
from jax.experimental import pallas as pl
from jax.experimental.pallas import tpu as pltpu

_LANE = 128


def _round_up(n, m):
    return ((n + m - 1) // m) * m


def _mlp_kernel(x_ref, w1_ref, b1_ref, wh_ref, bh_ref, w5_ref, b5_ref, o_ref):
    # MXU compute dtype (bf16 on the fast path, f32 on the correctness path).
    cdt = w1_ref.dtype

    # fc1 + ReLU (bias-add / ReLU stay in f32; dot accumulates in f32).
    h = jnp.dot(x_ref[...], w1_ref[...], preferred_element_type=jnp.float32) + b1_ref[...]
    h = jnp.maximum(h, 0.0)

    # fc2..fc4 + ReLU (stacked hidden weights; unrolled loop keeps LLO visibility).
    def hidden_layer(l, acc):
        acc = (jnp.dot(acc.astype(cdt), wh_ref[l], preferred_element_type=jnp.float32)
               + bh_ref[l])
        return jnp.maximum(acc, 0.0)

    h = lax.fori_loop(0, wh_ref.shape[0], hidden_layer, h, unroll=True)

    # fc5 (no activation): lane-full dot, then store only the real output columns.
    out = jnp.dot(h.astype(cdt), w5_ref[...], preferred_element_type=jnp.float32) + b5_ref[...]
    o_ref[...] = out[:, : o_ref.shape[1]].astype(o_ref.dtype)


def fully_connected_forward(x, params, dim_input, *, batch_tile=4096,
                            compute_dtype=jnp.bfloat16, out_dtype=jnp.float32):
    """params: list of (W, b) with W of shape (in, out), b of shape (1, out).

    Mirrors PyTorch: x.view(-1, dim_input) -> fc1..fc4 with ReLU -> fc5.
    """
    x2d = x.reshape(-1, dim_input).astype(compute_dtype)
    B = x2d.shape[0]
    H = params[0][0].shape[1]
    dim_output = params[-1][0].shape[1]

    # Lane-full hidden / fc5 widths (zero padding is exact: padded hidden units are 0
    # after bias-add, ReLU keeps them 0, and padded weight rows/cols are 0).
    Hp = _round_up(max(H, _LANE), _LANE)
    Op = _round_up(max(dim_output, _LANE), _LANE)

    def pad2(a, rows, cols):
        return jnp.pad(a, ((0, rows - a.shape[0]), (0, cols - a.shape[1])))

    (w1, b1), (w2, b2), (w3, b3), (w4, b4), (w5, b5) = params
    w1p = pad2(w1, dim_input, Hp).astype(compute_dtype)
    whp = jnp.stack([pad2(w, Hp, Hp) for w in (w2, w3, w4)]).astype(compute_dtype)
    w5p = pad2(w5, Hp, Op).astype(compute_dtype)
    # Biases stay f32 (VPU side; avoids any bf16 loss in the bias-add).
    b1p = pad2(b1, 1, Hp)
    bhp = jnp.stack([pad2(b, 1, Hp) for b in (b2, b3, b4)])
    b5p = pad2(b5, 1, Op)

    # Batch tiling: weights are VMEM-resident across the whole grid, x/out tiles are
    # streamed + double-buffered.  TB is always a multiple of the sublane packing
    # (8 for f32, 16 for bf16); medium/large batches get >= 2 grid steps so both v7x
    # TensorCores are used (batch axis is "parallel").
    mult = 16 if jnp.dtype(compute_dtype) == jnp.dtype(jnp.bfloat16) else 8
    batch_tile = _round_up(max(int(batch_tile), mult), mult)
    if B <= 2 * mult:
        TB = _round_up(max(B, mult), mult)                     # tiny batch: single tile
    else:
        TB = min(batch_tile, _round_up((B + 1) // 2, mult))    # >= 2 grid steps
    Bp = _round_up(B, TB)
    if Bp != B:
        x2d = jnp.pad(x2d, ((0, Bp - B), (0, 0)))
    grid = (Bp // TB,)

    cbytes = jnp.dtype(compute_dtype).itemsize
    obytes = jnp.dtype(out_dtype).itemsize

    # VMEM budget: double-buffered x/out tiles + (double-buffered) resident weights +
    # live f32 activations, plus headroom; clamped under v7x's 64 MiB-per-TC ceiling.
    weight_bytes = cbytes * (dim_input * Hp + 3 * Hp * Hp + Hp * Op) + 4 * (4 * Hp + Op)
    io_tile_bytes = 2 * (TB * dim_input * cbytes + TB * dim_output * obytes)
    live_bytes = 4 * TB * (3 * Hp + Op)
    vmem_limit = int(min(max(2 * weight_bytes + io_tile_bytes + live_bytes + (4 << 20),
                             16 << 20),
                         48 << 20))

    cost = pl.CostEstimate(
        flops=2 * Bp * (dim_input * Hp + 3 * Hp * Hp + Hp * Op),
        transcendentals=0,
        bytes_accessed=Bp * dim_input * cbytes + Bp * dim_output * obytes + weight_bytes,
    )

    resident2 = lambda i: (0, 0)
    resident3 = lambda i: (0, 0, 0)

    out_padded = pl.pallas_call(
        _mlp_kernel,
        out_shape=jax.ShapeDtypeStruct((Bp, dim_output), out_dtype),
        grid=grid,
        in_specs=[
            pl.BlockSpec((TB, dim_input), lambda i: (i, 0)),   # streamed x tile
            pl.BlockSpec((dim_input, Hp), resident2),          # fc1 W (resident)
            pl.BlockSpec((1, Hp), resident2),                  # fc1 b
            pl.BlockSpec((3, Hp, Hp), resident3),              # fc2..4 W stack
            pl.BlockSpec((3, 1, Hp), resident3),               # fc2..4 b stack
            pl.BlockSpec((Hp, Op), resident2),                 # fc5 W
            pl.BlockSpec((1, Op), resident2),                  # fc5 b
        ],
        # Real-width output block (last dim == full array dim): masked store in-kernel,
        # but ~12.8x less HBM writeback than the lane-padded layout.
        out_specs=pl.BlockSpec((TB, dim_output), lambda i: (i, 0)),
        compiler_params=pltpu.CompilerParams(
            dimension_semantics=("parallel",),
            vmem_limit_bytes=vmem_limit,
        ),
        cost_estimate=cost,
    )(x2d, w1p, b1p, whp, bhp, w5p, b5p)

    return out_padded[:B, :]


def init_params(key, dim_input, dim_output, num_neurons=64):
    """Deterministic init mimicking nn.Linear default (uniform +-1/sqrt(fan_in))."""
    dims = [(dim_input, num_neurons),
            (num_neurons, num_neurons),
            (num_neurons, num_neurons),
            (num_neurons, num_neurons),
            (num_neurons, dim_output)]
    params = []
    for i, (fan_in, fan_out) in enumerate(dims):
        kw, kb = jax.random.split(jax.random.fold_in(key, i))
        bound = 1.0 / jnp.sqrt(jnp.float32(fan_in))
        w = jax.random.uniform(kw, (fan_in, fan_out), jnp.float32, -bound, bound)
        b = jax.random.uniform(kb, (1, fan_out), jnp.float32, -bound, bound)
        params.append((w, b))
    return params


def reference_forward(x, params, dim_input):
    h = x.reshape(-1, dim_input)
    for i, (w, b) in enumerate(params):
        h = h @ w + b
        if i < len(params) - 1:
            h = jnp.maximum(h, 0.0)
    return h


if __name__ == "__main__":
    key = jax.random.PRNGKey(0)
    dim_input, dim_output, num_neurons = 16, 10, 64

    kx_small, kx_big, kp = jax.random.split(key, 3)
    params = init_params(kp, dim_input, dim_output, num_neurons)

    # Small batch, f32 compute path, non-flat input (exercises view(-1, dim_input)),
    # single-tile grid: tight correctness check.
    x_small = jax.random.normal(kx_small, (2, 4, dim_input), jnp.float32)
    out_small = jax.block_until_ready(
        fully_connected_forward(x_small, params, dim_input, compute_dtype=jnp.float32))
    ref_small = reference_forward(x_small, params, dim_input)
    assert out_small.shape == (8, dim_output)
    assert jnp.allclose(out_small, ref_small, atol=1e-4, rtol=1e-4)

    # Larger ragged batch -> padded to a multiple of TB, grid with >= 2 steps.
    x_big = jax.random.normal(kx_big, (1000, dim_input), jnp.float32)
    ref_big = reference_forward(x_big, params, dim_input)

    # f32 compute path (tight check on the multi-step grid).
    out_big_f32 = jax.block_until_ready(
        fully_connected_forward(x_big, params, dim_input, compute_dtype=jnp.float32))
    assert out_big_f32.shape == (1000, dim_output)
    assert jnp.allclose(out_big_f32, ref_big, atol=1e-4, rtol=1e-4)

    # Default fast path: bf16 operands on the MXU (f32 accumulate), looser tolerance.
    out_big_bf16 = jax.block_until_ready(
        fully_connected_forward(x_big, params, dim_input))
    assert out_big_bf16.shape == (1000, dim_output)
    assert jnp.allclose(out_big_bf16, ref_big, atol=3e-2, rtol=3e-2)

    print("KERNEL_OK")
</pallas_src>

<mosaic_0001>
module attributes {stable_mosaic.version = 11 : i64} {
  func.func @_mlp_kernel(%arg0: i32, %arg1: memref<8x16xf32, #tpu.memory_space<vmem>>, %arg2: memref<16x128xf32, #tpu.memory_space<vmem>>, %arg3: memref<1x128xf32, #tpu.memory_space<vmem>>, %arg4: memref<3x128x128xf32, #tpu.memory_space<vmem>>, %arg5: memref<3x1x128xf32, #tpu.memory_space<vmem>>, %arg6: memref<128x128xf32, #tpu.memory_space<vmem>>, %arg7: memref<1x128xf32, #tpu.memory_space<vmem>>, %arg8: memref<8x10xf32, #tpu.memory_space<vmem>>) attributes {dimension_semantics = [#tpu.dimension_semantics<parallel>], iteration_bounds = array<i64: 1>, scalar_prefetch = 0 : i64, scratch_operands = 0 : i64, tpu.core_type = #tpu.core_type<tc>, window_params = [{transform_indices = @transform_0, window_bounds = array<i64: 8, 16>}, {pipeline_mode = #tpu.pipeline_mode<synchronous>, transform_indices = @transform_1, window_bounds = array<i64: 16, 128>}, {pipeline_mode = #tpu.pipeline_mode<synchronous>, transform_indices = @transform_2, window_bounds = array<i64: 1, 128>}, {pipeline_mode = #tpu.pipeline_mode<synchronous>, transform_indices = @transform_3, window_bounds = array<i64: 3, 128, 128>}, {pipeline_mode = #tpu.pipeline_mode<synchronous>, transform_indices = @transform_4, window_bounds = array<i64: 3, 1, 128>}, {pipeline_mode = #tpu.pipeline_mode<synchronous>, transform_indices = @transform_5, window_bounds = array<i64: 128, 128>}, {pipeline_mode = #tpu.pipeline_mode<synchronous>, transform_indices = @transform_6, window_bounds = array<i64: 1, 128>}, {transform_indices = @transform_7, window_bounds = array<i64: 8, 10>}]} {
    %c0 = arith.constant 0 : index
    %c0_0 = arith.constant 0 : index
    %0 = vector.load %arg1[%c0, %c0_0] : memref<8x16xf32, #tpu.memory_space<vmem>>, vector<8x16xf32>
    %c0_1 = arith.constant 0 : index
    %c0_2 = arith.constant 0 : index
    %1 = vector.load %arg2[%c0_1, %c0_2] : memref<16x128xf32, #tpu.memory_space<vmem>>, vector<16x128xf32>
    %cst = arith.constant dense<0.000000e+00> : vector<8x128xf32>
    %2 = tpu.matmul %0, %1, %cst {dimension_numbers = #tpu.dot_dimension_numbers<[1], [0], [0], [1], [0, 0, 1, 1], [], []>} : vector<8x16xf32>, vector<16x128xf32>, vector<8x128xf32> -> vector<8x128xf32>
    %c0_3 = arith.constant 0 : index
    %c0_4 = arith.constant 0 : index
    %3 = vector.load %arg3[%c0_3, %c0_4] : memref<1x128xf32, #tpu.memory_space<vmem>>, vector<1x128xf32>
    %4 = vector.broadcast %3 : vector<1x128xf32> to vector<8x128xf32>
    %5 = arith.addf %2, %4 : vector<8x128xf32>
    %cst_5 = arith.constant 0.000000e+00 : f32
    %6 = vector.broadcast %cst_5 : f32 to vector<8x128xf32>
    %7 = arith.maximumf %5, %6 : vector<8x128xf32>
    %c0_i32 = arith.constant 0 : i32
    %8 = arith.index_cast %c0_i32 : i32 to index
    %c0_6 = arith.constant 0 : index
    %c0_7 = arith.constant 0 : index
    %9 = vector.load %arg4[%8, %c0_6, %c0_7] : memref<3x128x128xf32, #tpu.memory_space<vmem>>, vector<1x128x128xf32>
    %10 = vector.shape_cast %9 : vector<1x128x128xf32> to vector<128x128xf32>
    %cst_8 = arith.constant dense<0.000000e+00> : vector<8x128xf32>
    %11 = tpu.matmul %7, %10, %cst_8 {dimension_numbers = #tpu.dot_dimension_numbers<[1], [0], [0], [1], [0, 0, 1, 1], [], []>} : vector<8x128xf32>, vector<128x128xf32>, vector<8x128xf32> -> vector<8x128xf32>
    %12 = arith.index_cast %c0_i32 : i32 to index
    %c0_9 = arith.constant 0 : index
    %c0_10 = arith.constant 0 : index
    %13 = vector.load %arg5[%12, %c0_9, %c0_10] : memref<3x1x128xf32, #tpu.memory_space<vmem>>, vector<1x1x128xf32>
    %14 = vector.shape_cast %13 : vector<1x1x128xf32> to vector<1x128xf32>
    %15 = vector.broadcast %14 : vector<1x128xf32> to vector<8x128xf32>
    %16 = arith.addf %11, %15 : vector<8x128xf32>
    %cst_11 = arith.constant 0.000000e+00 : f32
    %17 = vector.broadcast %cst_11 : f32 to vector<8x128xf32>
    %18 = arith.maximumf %16, %17 : vector<8x128xf32>
    %c1_i32 = arith.constant 1 : i32
    %19 = arith.index_cast %c1_i32 : i32 to index
    %c0_12 = arith.constant 0 : index
    %c0_13 = arith.constant 0 : index
    %20 = vector.load %arg4[%19, %c0_12, %c0_13] : memref<3x128x128xf32, #tpu.memory_space<vmem>>, vector<1x128x128xf32>
    %21 = vector.shape_cast %20 : vector<1x128x128xf32> to vector<128x128xf32>
    %cst_14 = arith.constant dense<0.000000e+00> : vector<8x128xf32>
    %22 = tpu.matmul %18, %21, %cst_14 {dimension_numbers = #tpu.dot_dimension_numbers<[1], [0], [0], [1], [0, 0, 1, 1], [], []>} : vector<8x128xf32>, vector<128x128xf32>, vector<8x128xf32> -> vector<8x128xf32>
    %23 = arith.index_cast %c1_i32 : i32 to index
    %c0_15 = arith.constant 0 : index
    %c0_16 = arith.constant 0 : index
    %24 = vector.load %arg5[%23, %c0_15, %c0_16] : memref<3x1x128xf32, #tpu.memory_space<vmem>>, vector<1x1x128xf32>
    %25 = vector.shape_cast %24 : vector<1x1x128xf32> to vector<1x128xf32>
    %26 = vector.broadcast %25 : vector<1x128xf32> to vector<8x128xf32>
    %27 = arith.addf %22, %26 : vector<8x128xf32>
    %cst_17 = arith.constant 0.000000e+00 : f32
    %28 = vector.broadcast %cst_17 : f32 to vector<8x128xf32>
    %29 = arith.maximumf %27, %28 : vector<8x128xf32>
    %c2_i32 = arith.constant 2 : i32
    %30 = arith.index_cast %c2_i32 : i32 to index
    %c0_18 = arith.constant 0 : index
    %c0_19 = arith.constant 0 : index
    %31 = vector.load %arg4[%30, %c0_18, %c0_19] : memref<3x128x128xf32, #tpu.memory_space<vmem>>, vector<1x128x128xf32>
    %32 = vector.shape_cast %31 : vector<1x128x128xf32> to vector<128x128xf32>
    %cst_20 = arith.constant dense<0.000000e+00> : vector<8x128xf32>
    %33 = tpu.matmul %29, %32, %cst_20 {dimension_numbers = #tpu.dot_dimension_numbers<[1], [0], [0], [1], [0, 0, 1, 1], [], []>} : vector<8x128xf32>, vector<128x128xf32>, vector<8x128xf32> -> vector<8x128xf32>
    %34 = arith.index_cast %c2_i32 : i32 to index
    %c0_21 = arith.constant 0 : index
    %c0_22 = arith.constant 0 : index
    %35 = vector.load %arg5[%34, %c0_21, %c0_22] : memref<3x1x128xf32, #tpu.memory_space<vmem>>, vector<1x1x128xf32>
    %36 = vector.shape_cast %35 : vector<1x1x128xf32> to vector<1x128xf32>
    %37 = vector.broadcast %36 : vector<1x128xf32> to vector<8x128xf32>
    %38 = arith.addf %33, %37 : vector<8x128xf32>
    %cst_23 = arith.constant 0.000000e+00 : f32
    %39 = vector.broadcast %cst_23 : f32 to vector<8x128xf32>
    %40 = arith.maximumf %38, %39 : vector<8x128xf32>
    %c3_i32 = arith.constant 3 : i32
    %c0_24 = arith.constant 0 : index
    %c0_25 = arith.constant 0 : index
    %41 = vector.load %arg6[%c0_24, %c0_25] : memref<128x128xf32, #tpu.memory_space<vmem>>, vector<128x128xf32>
    %cst_26 = arith.constant dense<0.000000e+00> : vector<8x128xf32>
    %42 = tpu.matmul %40, %41, %cst_26 {dimension_numbers = #tpu.dot_dimension_numbers<[1], [0], [0], [1], [0, 0, 1, 1], [], []>} : vector<8x128xf32>, vector<128x128xf32>, vector<8x128xf32> -> vector<8x128xf32>
    %c0_27 = arith.constant 0 : index
    %c0_28 = arith.constant 0 : index
    %43 = vector.load %arg7[%c0_27, %c0_28] : memref<1x128xf32, #tpu.memory_space<vmem>>, vector<1x128xf32>
    %44 = vector.broadcast %43 : vector<1x128xf32> to vector<8x128xf32>
    %45 = arith.addf %42, %44 : vector<8x128xf32>
    %46 = vector.extract_strided_slice %45 {offsets = [0, 0], sizes = [8, 10], strides = [1, 1]} : vector<8x128xf32> to vector<8x10xf32>
    %c0_29 = arith.constant 0 : index
    %c0_30 = arith.constant 0 : index
    %47 = vector.load %arg8[%c0_29, %c0_30] : memref<8x10xf32, #tpu.memory_space<vmem>>, vector<8x10xf32>
    tpu.vector_store %arg8[%c0_29, %c0_30], %46 {strides = array<i32>} : memref<8x10xf32, #tpu.memory_space<vmem>>, vector<8x10xf32>,
    return
  }
  func.func @transform_0(%arg0: i32) -> (i32, i32) {
    %c0_i32 = arith.constant 0 : i32
    %c0_i32_0 = arith.constant 0 : i32
    return %arg0, %c0_i32 : i32, i32
  }
  func.func @transform_1(%arg0: i32) -> (i32, i32) {
    %c0_i32 = arith.constant 0 : i32
    %c0_i32_0 = arith.constant 0 : i32
    %c0_i32_1 = arith.constant 0 : i32
    return %c0_i32, %c0_i32_0 : i32, i32
  }
  func.func @transform_2(%arg0: i32) -> (i32, i32) {
    %c0_i32 = arith.constant 0 : i32
    %c0_i32_0 = arith.constant 0 : i32
    %c0_i32_1 = arith.constant 0 : i32
    return %c0_i32, %c0_i32_0 : i32, i32
  }
  func.func @transform_3(%arg0: i32) -> (i32, i32, i32) {
    %c0_i32 = arith.constant 0 : i32
    %c0_i32_0 = arith.constant 0 : i32
    %c0_i32_1 = arith.constant 0 : i32
    %c0_i32_2 = arith.constant 0 : i32
    return %c0_i32, %c0_i32_0, %c0_i32_1 : i32, i32, i32
  }
  func.func @transform_4(%arg0: i32) -> (i32, i32, i32) {
    %c0_i32 = arith.constant 0 : i32
    %c0_i32_0 = arith.constant 0 : i32
    %c0_i32_1 = arith.constant 0 : i32
    %c0_i32_2 = arith.constant 0 : i32
    return %c0_i32, %c0_i32_0, %c0_i32_1 : i32, i32, i32
  }
  func.func @transform_5(%arg0: i32) -> (i32, i32) {
    %c0_i32 = arith.constant 0 : i32
    %c0_i32_0 = arith.constant 0 : i32
    %c0_i32_1 = arith.constant 0 : i32
    return %c0_i32, %c0_i32_0 : i32, i32
  }
  func.func @transform_6(%arg0: i32) -> (i32, i32) {
    %c0_i32 = arith.constant 0 : i32
    %c0_i32_0 = arith.constant 0 : i32
    %c0_i32_1 = arith.constant 0 : i32
    return %c0_i32, %c0_i32_0 : i32, i32
  }
  func.func @transform_7(%arg0: i32) -> (i32, i32) {
    %c0_i32 = arith.constant 0 : i32
    %c0_i32_0 = arith.constant 0 : i32
    return %arg0, %c0_i32 : i32, i32
  }
}

</mosaic_0001>

<bundles_post_ra>
// kernel: tpu_custom_call.1
= control target key start
LH: loop header
LB: loop body
LE: loop exit
PB: predicated region body
PF: predicated region fallthrough
CT: control target
= control target key end

     0   :  { %12 = vsyncpa [#allocation3], 0  ;;  %s567_s0 = inlined_call_operand.hbm [shape: f32[8,16], index: 0, kind: input, shape index: {}]   ;;  %s568_s1 = inlined_call_operand.hbm [shape: f32[16,128], index: 1, kind: input, shape index: {}]   ;;  %s569_s2 = inlined_call_operand.hbm [shape: f32[1,128], index: 2, kind: input, shape index: {}]   ;;  %s570_s3 = inlined_call_operand.hbm [shape: f32[3,128,128], index: 3, kind: input, shape index: {}]   ;;  %s571_s4 = inlined_call_operand.vmem [shape: f32[3,1,128], index: 4, kind: input, shape index: {}]   ;;  %s572_s5 = inlined_call_operand.hbm [shape: f32[128,128], index: 5, kind: input, shape index: {}]   ;;  %s573_s6 = inlined_call_operand.vmem [shape: f32[1,128], index: 6, kind: input, shape index: {}]   ;;  %s574_s7 = inlined_call_operand.hbm [shape: f32[8,10], index: 7, kind: output, shape index: {}]  }
   0x1   :  { %13 = vsyncpa [#allocation6], 0 }
   0x2   :  { %14 = vsyncpa [#allocation9], 0  ;;  %s31_s26 = sshll.u32 %s568_s1, 4  ;;  %s32_s26 = int_to_ptr.hbm [resolvable:$true] %s31_s26 }
   0x3   :  { %15 = vsyncpa [#allocation4], 0  ;;  %s489_s27 = smov [#allocation5]   ;;  %s55_s8 = sshll.u32 %s570_s3, 4  ;;  %s56_s8 = int_to_ptr.hbm [resolvable:$true] %s55_s8 }
   0x4   :  { %s33_s28 = sshll.u32 %s489_s27, 4  ;;  %s490_s9 = smov 128   ;;  %s34_s28 = int_to_ptr.vmem [resolvable:$true] %s33_s28 }
   0x5   :  { %s491_s10 = smov 8   ;;  %s492_s11 = smov [#allocation8]  }
   0x6   :  { %39 = dma.hbm_to_vmem [thread:$0]  %s32_s26, 256, %s34_s28, [#allocation6], %s490_s9, %s490_s9, %s491_s10  }
   0x7   :  { %s57_s12 = sshll.u32 %s492_s11, 4  ;;  %s21_s15 = sshll.u32 %s567_s0, 4  ;;  %s58_s12 = int_to_ptr.vmem [resolvable:$true] %s57_s12  ;;  %s22_s15 = int_to_ptr.hbm [resolvable:$true] %s21_s15 }
   0x8   :  { %63 = dma.hbm_to_vmem [thread:$0]  %s56_s8, 6144, %s58_s12, [#allocation9], %s490_s9, %s490_s9, %s491_s10  }
   0x9   :  { %s45_s17 = sshll.u32 %s569_s2, 4  ;;  %s493_s18 = smov [#allocation2]   ;;  %s46_s17 = int_to_ptr.hbm [resolvable:$true] %s45_s17 }
   0xa   :  { %s23_s19 = sshll.u32 %s493_s18, 4  ;;  %s494_s3 = smov [#allocation7]   ;;  %s24_s19 = int_to_ptr.vmem [resolvable:$true] %s23_s19 }
   0xb   :  { %26 = dma.hbm_to_vmem [thread:$0]  %s22_s15, 128, %s24_s19, [#allocation3]  }
   0xc   :  { %s47_s20 = sshll.u32 %s494_s3, 4  ;;  %s70_s23 = sshll.u32 %s572_s5, 4  ;;  %s48_s20 = int_to_ptr.vmem [resolvable:$true] %s47_s20  ;;  %s71_s23 = int_to_ptr.hbm [resolvable:$true] %s70_s23 }
   0xd   :  { %50 = dma.hbm_to_vmem [thread:$0]  %s46_s17, 16, %s48_s20, [#allocation6]  }
   0xe   :  { %s495_s0 = smov [#allocation10]  }
   0xf   :  { %s72_s24 = sshll.u32 %s495_s0, 4  ;;  %s73_s24 = int_to_ptr.vmem [resolvable:$true] %s72_s24 }
  0x10   :  { %78 = dma.hbm_to_vmem [thread:$0]  %s71_s23, 2048, %s73_s24, [#allocation9], %s490_s9, %s490_s9, %s491_s10  }
  0x11   :  { %481 = dma.done.wait [#allocation3], 128  }
  0x12   :  { %482 = vsyncadd [#allocation3], 4294967168 }
  0x13   :  { %483 = dma.done.wait [#allocation6], 272  }
  0x14   :  { %484 = vsyncadd [#allocation6], 4294967024 }
  0x15   :  { %485 = dma.done.wait [#allocation9], 8192  }
  0x16   :  { %486 = vsyncadd [#allocation9], 4294959104  ;;  %v103_v0 = vld [vmem:[#allocation5 + $0x8] sm:$0xff]  ;;  %v102_v1 = vld [vmem:[#allocation5] sm:$0xff]  ;;  %vm108_vm0 = vcmask 130048   ;;  %s496_s8 = smov [#allocation11]  }
  0x17   :  { %126 = vmatpush.msra.mxu0 %v103_v0  ;;  %v101_v2 = vld [vmem:[#allocation2] sm:$0xff]  ;;  %v148_v3 = vld [vmem:[#allocation8 + $0x78] sm:$0xff]  ;;  %v147_v4 = vld [vmem:[#allocation8 + $0x70] sm:$0xff]  ;;  %s307_s9 = sshll.u32 %s496_s8, 4  ;;  %s309_s12 = sshll.u32 %s574_s7, 4  ;;  %vm300_vm1 = vcmask 80896   ;;  %s308_s9 = int_to_ptr.vmem [resolvable:$true] %s307_s9  ;;  %s310_s12 = int_to_ptr.hbm [resolvable:$true] %s309_s12 }
  0x18   :  { %153 = vmatpush.msra.mxu1 %v148_v3  ;;  %v146_v5 = vld [vmem:[#allocation8 + $0x68] sm:$0xff]  ;;  %v145_v6 = vld [vmem:[#allocation8 + $0x60] sm:$0xff]  ;;  %v144_v7 = vld [vmem:[#allocation8 + $0x58] sm:$0xff] }
  0x19   :  { %127 = vmatpush.msra.mxu0 %v102_v1  ;;  %v143_v8 = vld [vmem:[#allocation8 + $0x50] sm:$0xff]  ;;  %v142_v9 = vld [vmem:[#allocation8 + $0x48] sm:$0xff]  ;;  %v141_v10 = vld [vmem:[#allocation8 + $0x40] sm:$0xff] }
  0x1a   :  { %321 = vmatmul.msk.f32.vlgmr.msra.gmra.mxu0 %vm108_vm0, %v101_v2  ;;  %154 = vmatpush.msra.mxu1 %v147_v4  ;;  %v140_v11 = vld [vmem:[#allocation8 + $0x38] sm:$0xff]  ;;  %v139_v12 = vld [vmem:[#allocation8 + $0x30] sm:$0xff]  ;;  %v138_v13 = vld [vmem:[#allocation8 + $0x28] sm:$0xff] }
  0x1b   :  { %v137_v14 = vld [vmem:[#allocation8 + $0x20] sm:$0xff]  ;;  %v136_v15 = vld [vmem:[#allocation8 + $0x18] sm:$0xff]  ;;  %v135_v16 = vld [vmem:[#allocation8 + $0x10] sm:$0xff] }
  0x1c   :  { %155 = vmatpush.msra.mxu1 %v146_v5  ;;  %v134_v17 = vld [vmem:[#allocation8 + $0x8] sm:$0xff]  ;;  %v133_v18 = vld [vmem:[#allocation8] sm:$0xff]  ;;  %v190_v19 = vld [vmem:[#allocation8 + $0xf8] sm:$0xff] }
  0x1d   :  { %v189_v20 = vld [vmem:[#allocation8 + $0xf0] sm:$0xff]  ;;  %196 = vmatpush.msra.mxu2 %v190_v19  ;;  %v188_v21 = vld [vmem:[#allocation8 + $0xe8] sm:$0xff]  ;;  %v187_v22 = vld [vmem:[#allocation8 + $0xe0] sm:$0xff] }
  0x1e   :  { %156 = vmatpush.msra.mxu1 %v145_v6  ;;  %v186_v23 = vld [vmem:[#allocation8 + $0xd8] sm:$0xff]  ;;  %v185_v24 = vld [vmem:[#allocation8 + $0xd0] sm:$0xff]  ;;  %v184_v25 = vld [vmem:[#allocation8 + $0xc8] sm:$0xff] }
  0x1f   :  { %197 = vmatpush.msra.mxu2 %v189_v20  ;;  %v183_v26 = vld [vmem:[#allocation8 + $0xc0] sm:$0xff]  ;;  %v182_v27 = vld [vmem:[#allocation8 + $0xb8] sm:$0xff]  ;;  %v181_v28 = vld [vmem:[#allocation8 + $0xb0] sm:$0xff] }
  0x20   :  { %157 = vmatpush.msra.mxu1 %v144_v7  ;;  %v180_v29 = vld [vmem:[#allocation8 + $0xa8] sm:$0xff]  ;;  %v179_v30 = vld [vmem:[#allocation8 + $0xa0] sm:$0xff]  ;;  %v178_v31 = vld [vmem:[#allocation8 + $0x98] sm:$0xff] }
  0x21   :  { %198 = vmatpush.msra.mxu2 %v188_v21  ;;  %v332_v32 = vld [vmem:[#allocation7] ss:$0 sm:$0xff]  ;;  %v177_v36 = vld [vmem:[#allocation8 + $0x90] sm:$0xff]  ;;  %v176_v37 = vld [vmem:[#allocation8 + $0x88] sm:$0xff] }
  0x22   :  { %158 = vmatpush.msra.mxu1 %v143_v8  ;;  %v175_v38 = vld [vmem:[#allocation8 + $0x80] sm:$0xff]  ;;  %v233_v39 = vld [vmem:[#allocation8 + $0x178] sm:$0xff]  ;;  %v232_v40 = vld [vmem:[#allocation8 + $0x170] sm:$0xff] }
  0x23   :  { %199 = vmatpush.msra.mxu2 %v187_v22  ;;  %239 = vmatpush.msra.mxu3 %v233_v39  ;;  %v231_v41 = vld [vmem:[#allocation8 + $0x168] sm:$0xff]  ;;  %v230_v42 = vld [vmem:[#allocation8 + $0x160] sm:$0xff]  ;;  %v229_v43 = vld [vmem:[#allocation8 + $0x158] sm:$0xff] }
  0x24   :  { %159 = vmatpush.msra.mxu1 %v142_v9  ;;  %v228_v44 = vld [vmem:[#allocation8 + $0x150] sm:$0xff]  ;;  %v227_v45 = vld [vmem:[#allocation8 + $0x148] sm:$0xff]  ;;  %v226_v46 = vld [vmem:[#allocation8 + $0x140] sm:$0xff] }
  0x25   :  { %200 = vmatpush.msra.mxu2 %v186_v23  ;;  %240 = vmatpush.msra.mxu3 %v232_v40  ;;  %v225_v47 = vld [vmem:[#allocation8 + $0x138] sm:$0xff]  ;;  %v224_v48 = vld [vmem:[#allocation8 + $0x130] sm:$0xff]  ;;  %v223_v49 = vld [vmem:[#allocation8 + $0x128] sm:$0xff] }
  0x26   :  { %160 = vmatpush.msra.mxu1 %v141_v10  ;;  %v222_v50 = vld [vmem:[#allocation8 + $0x120] sm:$0xff]  ;;  %v221_v51 = vld [vmem:[#allocation8 + $0x118] sm:$0xff]  ;;  %v220_v56 = vld [vmem:[#allocation8 + $0x110] sm:$0xff] }
  0x27   :  { %201 = vmatpush.msra.mxu2 %v185_v24  ;;  %241 = vmatpush.msra.mxu3 %v231_v41  ;;  %v333_v52 = vld [vmem:[%s571_s4] ss:$0 sm:$0xff]  ;;  %v219_v57 = vld [vmem:[#allocation8 + $0x108] sm:$0xff]  ;;  %v275_v59 = vld [vmem:[#allocation10 + $0x78] sm:$0xff] }
  0x28   :  { %161 = vmatpush.msra.mxu1 %v140_v11  ;;  %v218_v58 = vld [vmem:[#allocation8 + $0x100] sm:$0xff]  ;;  %v274_v60 = vld [vmem:[#allocation10 + $0x70] sm:$0xff]  ;;  %280 = vmatpush.msrb.mxu0 %v275_v59  ;;  %v273_v61 = vld [vmem:[#allocation10 + $0x68] sm:$0xff] }
  0x29   :  { %202 = vmatpush.msra.mxu2 %v184_v25  ;;  %242 = vmatpush.msra.mxu3 %v230_v42  ;;  %v272_v62 = vld [vmem:[#allocation10 + $0x60] sm:$0xff]  ;;  %v271_v63 = vld [vmem:[#allocation10 + $0x58] sm:$0xff]  ;;  %v270_v0 = vld [vmem:[#allocation10 + $0x50] sm:$0xff] }
  0x2a   :  { %162 = vmatpush.msra.mxu1 %v139_v12  ;;  %281 = vmatpush.msrb.mxu0 %v274_v60  ;;  %v269_v1 = vld [vmem:[#allocation10 + $0x48] sm:$0xff]  ;;  %v268_v2 = vld [vmem:[#allocation10 + $0x40] sm:$0xff]  ;;  %v267_v3 = vld [vmem:[#allocation10 + $0x38] sm:$0xff] }
  0x2b   :  { %203 = vmatpush.msra.mxu2 %v183_v26  ;;  %243 = vmatpush.msra.mxu3 %v229_v43  ;;  %v266_v4 = vld [vmem:[#allocation10 + $0x30] sm:$0xff]  ;;  %v265_v5 = vld [vmem:[#allocation10 + $0x28] sm:$0xff]  ;;  %v264_v6 = vld [vmem:[#allocation10 + $0x20] sm:$0xff] }
  0x2c   :  { %163 = vmatpush.msra.mxu1 %v138_v13  ;;  %282 = vmatpush.msrb.mxu0 %v273_v61  ;;  %v263_v7 = vld [vmem:[#allocation10 + $0x18] sm:$0xff]  ;;  %v334_v8 = vld [vmem:[%s571_s4 + $0x1] ss:$0 sm:$0xff]  ;;  %v262_v12 = vld [vmem:[#allocation10 + $0x10] sm:$0xff] }
  0x2d   :  { %204 = vmatpush.msra.mxu2 %v182_v27  ;;  %244 = vmatpush.msra.mxu3 %v228_v44  ;;  %v261_v13 = vld [vmem:[#allocation10 + $0x8] sm:$0xff]  ;;  %v336_v19 = vld [vmem:[%s573_s6] ss:$0 sm:$0xff] }
  0x2e   :  { %164 = vmatpush.msra.mxu1 %v137_v14  ;;  %283 = vmatpush.msrb.mxu0 %v272_v62  ;;  %v260_v14 = vld [vmem:[#allocation10] sm:$0xff] }
  0x2f   :  { %205 = vmatpush.msra.mxu2 %v181_v28  ;;  %245 = vmatpush.msra.mxu3 %v227_v45 }
  0x30   :  { %165 = vmatpush.msra.mxu1 %v136_v15  ;;  %284 = vmatpush.msrb.mxu0 %v271_v63  ;;  %v335_v15 = vld [vmem:[%s571_s4 + $0x2] ss:$0 sm:$0xff] }
  0x31   :  { %206 = vmatpush.msra.mxu2 %v180_v29  ;;  %246 = vmatpush.msra.mxu3 %v226_v46 }
  0x32   :  { %166 = vmatpush.msra.mxu1 %v135_v16  ;;  %285 = vmatpush.msrb.mxu0 %v270_v0 }
  0x33   :  { %207 = vmatpush.msra.mxu2 %v179_v30  ;;  %247 = vmatpush.msra.mxu3 %v225_v47 }
  0x34   :  { %167 = vmatpush.msra.mxu1 %v134_v17  ;;  %286 = vmatpush.msrb.mxu0 %v269_v1 }
  0x35   :  { %208 = vmatpush.msra.mxu2 %v178_v31  ;;  %248 = vmatpush.msra.mxu3 %v224_v48 }
  0x36   :  { %168 = vmatpush.msra.mxu1 %v133_v18  ;;  %287 = vmatpush.msrb.mxu0 %v268_v2 }
  0x37   :  { %209 = vmatpush.msra.mxu2 %v177_v36  ;;  %249 = vmatpush.msra.mxu3 %v223_v49 }
  0x38   :  { %288 = vmatpush.msrb.mxu0 %v267_v3 }
  0x39   :  { %210 = vmatpush.msra.mxu2 %v176_v37  ;;  %250 = vmatpush.msra.mxu3 %v222_v50 }
  0x3a   :  { %289 = vmatpush.msrb.mxu0 %v266_v4 }
  0x3b   :  { %211 = vmatpush.msra.mxu2 %v175_v38  ;;  %251 = vmatpush.msra.mxu3 %v221_v51 }
  0x3c   :  { %290 = vmatpush.msrb.mxu0 %v265_v5 }
  0x3d   :  { %252 = vmatpush.msra.mxu3 %v220_v56 }
  0x3e   :  { %291 = vmatpush.msrb.mxu0 %v264_v6 }
  0x3f   :  { %253 = vmatpush.msra.mxu3 %v219_v57 }
  0x40   :  { %292 = vmatpush.msrb.mxu0 %v263_v7 }
  0x41   :  { %254 = vmatpush.msra.mxu3 %v218_v58 }
  0x42   :  { %293 = vmatpush.msrb.mxu0 %v262_v12 }
  0x44   :  { %294 = vmatpush.msrb.mxu0 %v261_v13 }
  0x46   :  { %295 = vmatpush.msrb.mxu0 %v260_v14 }
  0x97   :  { %v129_v33 = vpop.f32.mrf.mxu0 }
  0x98   :  { %v130_v34 = vadd.f32 %v332_v32, %v129_v33 }
  0x9a   :  { %v132_v35 = vmax.f32 %v130_v34, 0.0 }
  0x9c   :  { %169 = vmatmul.f32.vlgmr.msra.gmra.mxu1 %v132_v35 }
 0x119   :  { %v170_v53 = vpop.f32.mrf.mxu1 }
 0x11a   :  { %v171_v54 = vadd.f32 %v333_v52, %v170_v53 }
 0x11c   :  { %v173_v55 = vmax.f32 %v171_v54, 0.0 }
 0x11e   :  { %212 = vmatmul.f32.vlgmr.msra.gmra.mxu2 %v173_v55 }
 0x1a1   :  { %v213_v9 = vpop.f32.mrf.mxu2 }
 0x1a2   :  { %v214_v10 = vadd.f32 %v334_v8, %v213_v9 }
 0x1a4   :  { %v216_v11 = vmax.f32 %v214_v10, 0.0 }
 0x1a6   :  { %255 = vmatmul.f32.vlgmr.msra.gmra.mxu3 %v216_v11 }
 0x229   :  { %v256_v16 = vpop.f32.mrf.mxu3 }
 0x22a   :  { %v257_v17 = vadd.f32 %v335_v15, %v256_v16 }
 0x22c   :  { %v259_v18 = vmax.f32 %v257_v17, 0.0 }
 0x22e   :  { %296 = vmatmul.f32.vlgmr.msrb.gmra.mxu0 %v259_v18 }
 0x2ab   :  { %v297_v20 = vpop.f32.mrf.mxu0 }
 0x2ac   :  { %v298_v21 = vadd.f32 %v336_v19, %v297_v20 }
 0x2ae   :  { %301 = vst.msk [vmem:[#allocation11] sm:$0xff] %vm300_vm1, %v298_v21 }
 0x2af   :  { %312 = dma.vmem_to_hbm [thread:$0]  %s308_s9, 128, %s310_s12, [#allocation4]  }
 0x2b0   :  { %487 = dma.done.wait [#allocation4], 128  }
 0x2b1   :  { %488 = vsyncadd [#allocation4], 4294967168 }
 0x2b2   :  { %317 = vsyncpa [#allocation3], 1 }
 0x2b3   :  { %318 = vsyncpa [#allocation6], 1 }
 0x2b4   :  { %319 = vsyncpa [#allocation9], 1 }
 0x2b5   :  { %320 = vsyncpa [#allocation4], 1 }

</bundles_post_ra>
